<compile_context>
chip_gen: v7x
topology: tpu7x:2x2x1
jax: 0.10.0
libtpu: 0.0.40
codegen_flags: <defaults>
</compile_context>

<pallas_src>
import functools
import math

import jax
import jax.numpy as jnp
from jax.experimental import pallas as pl
from jax.experimental.pallas import tpu as pltpu


def _pos_encoding_table(max_len: int, embedding_size: int) -> jnp.ndarray:
    """Build the PE table exactly like the PyTorch __init__, kept 2-D.

    Note: like the canonical PyTorch implementation, this assumes an even
    embedding_size (odd E would shape-mismatch in the cos half).
    """
    position = jnp.arange(0, max_len, dtype=jnp.float32)[:, None]          # (max_len, 1)
    div_term = jnp.exp(
        jnp.arange(0, embedding_size, 2, dtype=jnp.float32)
        * (-math.log(10000.0) / embedding_size)
    )                                                                       # (E/2,)
    pe = jnp.zeros((max_len, embedding_size), dtype=jnp.float32)
    pe = pe.at[:, 0::2].set(jnp.sin(position * div_term))
    pe = pe.at[:, 1::2].set(jnp.cos(position * div_term))
    return pe                                                               # (max_len, E)


def _add_pe_kernel(x_ref, pe_ref, o_ref, *, batch: int):
    # x_ref / o_ref: (TS, batch*embed) lane-dense tiles.
    # pe_ref:        (TS, embed) tile; replicate along the lane axis in-register
    #                so HBM never carries the batch-replicated table.
    pe = pe_ref[...]
    if batch > 1:
        pe = jnp.concatenate([pe] * batch, axis=-1)      # (TS, batch*embed)
    o_ref[...] = x_ref[...] + pe


def _choose_seq_tile(seq: int, lane_width: int, pe_lane_width: int, dtype,
                     target_bytes: int = 2 << 20,
                     vmem_budget: int = 12 << 20) -> int:
    """Pick the seq tile using *padded* VMEM byte counts.

    lane_width    = batch*embed (x / out lane axis)
    pe_lane_width = embed       (pe lane axis)
    """
    itemsize = jnp.dtype(dtype).itemsize
    # Sublane granularity per dtype (packed dtypes pack along sublanes).
    sub = {4: 8, 2: 16, 1: 32}.get(itemsize, 8)

    x_row = pl.cdiv(lane_width, 128) * 128 * itemsize        # padded bytes / row
    pe_row = pl.cdiv(pe_lane_width, 128) * 128 * itemsize

    # ~target_bytes of (padded) x per tile.
    ts = max(sub, (target_bytes // x_row) // sub * sub)

    # Live footprint: (x + out + pe) tiles, each double-buffered.
    per_row_total = 2 * (2 * x_row + pe_row)
    ts = min(ts, max(sub, (vmem_budget // per_row_total) // sub * sub))

    # No point tiling past (padded) seq.
    seq_pad = pl.cdiv(seq, sub) * sub
    ts = min(ts, seq_pad)

    # Prefer >= 2 grid steps so the "parallel" axis shards across both v7x
    # TensorCores (harmless no-op on v5e / v6e).
    if seq_pad >= 2 * sub and ts >= seq_pad:
        ts = pl.cdiv(seq_pad // 2, sub) * sub
    return ts


def positional_encoding_forward(x: jnp.ndarray, pe: jnp.ndarray,
                                *, seq_tile: int | None = None) -> jnp.ndarray:
    """x: (seq, batch, embed); pe: (max_len, embed) with max_len >= seq."""
    seq, batch, embed = x.shape
    if pe.dtype != x.dtype:
        # TODO(synk): cache the cast table per dtype so this XLA op is not
        # re-run on every forward call.
        pe = pe.astype(x.dtype)

    be = batch * embed
    x2 = x.reshape(seq, be)                      # free contiguous, lane-dense fold

    ts = seq_tile if seq_tile is not None else _choose_seq_tile(
        seq, be, embed, x.dtype)
    grid = (pl.cdiv(seq, ts),)

    out2 = pl.pallas_call(
        functools.partial(_add_pe_kernel, batch=batch),
        out_shape=jax.ShapeDtypeStruct((seq, be), x.dtype),
        grid_spec=pltpu.PrefetchScalarGridSpec(
            num_scalar_prefetch=0,
            grid=grid,
            in_specs=[
                # x: seq-tiled, lane axis = batch*embed (full extent).
                pl.BlockSpec((ts, be), lambda i: (i, 0)),
                # pe: same seq tile, lane axis = embed (full extent); the seq
                # slice is selected purely by the index_map (no wrapper slice).
                pl.BlockSpec((ts, embed), lambda i: (i, 0)),
            ],
            out_specs=pl.BlockSpec((ts, be), lambda i: (i, 0)),
        ),
        compiler_params=pltpu.CompilerParams(
            dimension_semantics=("parallel",),   # megacore sharding on v7x
        ),
    )(x2, pe)

    return out2.reshape(seq, batch, embed)


if __name__ == "__main__":
    embedding_size = 32
    max_len = 64          # small max_len; semantics identical to max_len=5000
    seq_len = 8
    batch = 2

    pe = _pos_encoding_table(max_len, embedding_size)

    key = jax.random.PRNGKey(0)
    x = jax.random.normal(key, (seq_len, batch, embedding_size), dtype=jnp.float32)

    out = positional_encoding_forward(x, pe)
    out = jax.block_until_ready(out)

    # Reference check in plain JAX (same math as the PyTorch forward).
    ref = x + pe[:seq_len][:, None, :]
    assert out.shape == (seq_len, batch, embedding_size)
    assert jnp.allclose(out, ref, atol=1e-6, rtol=1e-6)

    print("KERNEL_OK")
</pallas_src>

<mosaic_0001>
module attributes {stable_mosaic.version = 11 : i64} {
  func.func @_add_pe_kernel(%arg0: i32, %arg1: memref<8x64xf32, #tpu.memory_space<vmem>>, %arg2: memref<8x32xf32, #tpu.memory_space<vmem>>, %arg3: memref<8x64xf32, #tpu.memory_space<vmem>>) attributes {dimension_semantics = [#tpu.dimension_semantics<parallel>], iteration_bounds = array<i64: 1>, scalar_prefetch = 0 : i64, scratch_operands = 0 : i64, tpu.core_type = #tpu.core_type<tc>, window_params = [{transform_indices = @transform_0, window_bounds = array<i64: 8, 64>}, {transform_indices = @transform_1, window_bounds = array<i64: 8, 32>}, {transform_indices = @transform_2, window_bounds = array<i64: 8, 64>}]} {
    %c0 = arith.constant 0 : index
    %c0_0 = arith.constant 0 : index
    %0 = vector.load %arg2[%c0, %c0_0] : memref<8x32xf32, #tpu.memory_space<vmem>>, vector<8x32xf32>
    %1 = tpu.concatenate %0, %0 in 1 : vector<8x32xf32>, vector<8x32xf32> -> vector<8x64xf32>
    %c0_1 = arith.constant 0 : index
    %c0_2 = arith.constant 0 : index
    %2 = vector.load %arg1[%c0_1, %c0_2] : memref<8x64xf32, #tpu.memory_space<vmem>>, vector<8x64xf32>
    %3 = arith.addf %2, %1 : vector<8x64xf32>
    %c0_3 = arith.constant 0 : index
    %c0_4 = arith.constant 0 : index
    %4 = vector.load %arg3[%c0_3, %c0_4] : memref<8x64xf32, #tpu.memory_space<vmem>>, vector<8x64xf32>
    tpu.vector_store %arg3[%c0_3, %c0_4], %3 {strides = array<i32>} : memref<8x64xf32, #tpu.memory_space<vmem>>, vector<8x64xf32>,
    return
  }
  func.func @transform_0(%arg0: i32) -> (i32, i32) {
    %c0_i32 = arith.constant 0 : i32
    %c0_i32_0 = arith.constant 0 : i32
    return %arg0, %c0_i32 : i32, i32
  }
  func.func @transform_1(%arg0: i32) -> (i32, i32) {
    %c0_i32 = arith.constant 0 : i32
    %c0_i32_0 = arith.constant 0 : i32
    return %arg0, %c0_i32 : i32, i32
  }
  func.func @transform_2(%arg0: i32) -> (i32, i32) {
    %c0_i32 = arith.constant 0 : i32
    %c0_i32_0 = arith.constant 0 : i32
    return %arg0, %c0_i32 : i32, i32
  }
}

</mosaic_0001>

<bundles_post_ra>
// kernel: tpu_custom_call.1
= control target key start
LH: loop header
LB: loop body
LE: loop exit
PB: predicated region body
PF: predicated region fallthrough
CT: control target
= control target key end

     0   :  { %s98_s0 = inlined_call_operand.vmem [shape: f32[8,64], index: 0, kind: input, shape index: {}]   ;;  %s99_s1 = inlined_call_operand.vmem [shape: f32[64,32], index: 1, kind: input, shape index: {}]   ;;  %s100_s2 = inlined_call_operand.hbm [shape: f32[8,64], index: 2, kind: output, shape index: {}]  }
   0x1   :  { %v12_v0 = vld [vmem:[%s99_s1] sm:$0xff] }
   0x2   :  { %7 = vsyncpa [#allocation3], 0  ;;  %s63_s11 = smov 32   ;;  %vm17_vm0 = vcmask 261120   ;;  %v19_v1 = vld [vmem:[%s98_s0] sm:$0xff]  ;;  %s64_s14 = smov [#allocation2]  }
   0x3   :  { %14 = vrot.lane.b32.xlu0 %v12_v0, %s63_s11  ;;  %s29_s15 = sshll.u32 %s64_s14, 4  ;;  %vm21_vm1 = vcmask 523264   ;;  %s30_s15 = int_to_ptr.vmem [resolvable:$true] %s29_s15 }
   0x4   :  { %s39_s16 = scalar_lea.vmem %s30_s15, 128  ;;  %p44_p1 = scmp.lt.s32.totalorder %s30_s15, %s30_s15 }
   0x5   :  { %p40_p0 = scmp.ne.s32.totalorder %s30_s15, %s39_s16  ;;  %p45_p2 = scmp.lt.s32.totalorder %s39_s16, %s39_s16 }
   0x7   :  { %p46_p3 = por %p45_p2, %p44_p1 }
   0x9   :  { %p47_p4 = pnand %p46_p3, %p40_p0 }
  0x75   :  { %v15_v2 = vpop.permute.xlu0 %14 }
  0x76   :  { %v18_v3 = vsel %vm17_vm0, %v12_v0, %v15_v2 }
  0x77   :  { %v20_v4 = vadd.f32 %v19_v1, %v18_v3 }
  0x79   :  { %22 = vst.msk [vmem:[#allocation2] sm:$0xff] %vm21_vm1, %v20_v4 }
  0x7a   :  { %50 = shalt.err (!%p47_p4)
}
  0x7b   :  { %s51_s18 = scalar_lea.hbm %s100_s2, 128 }
  0x7c   :  { %p52_p5 = scmp.ne.s32.totalorder %s100_s2, %s51_s18  ;;  %p55_p6 = scmp.lt.u32.totalorder %s51_s18, %s100_s2 }
  0x7e   :  { %p57_p7 = pnand %p55_p6, %p52_p5 }
  0x80   :  { %60 = shalt.err (!%p57_p7)
}
  0x81   :  { %32 = dma.vmem_to_hbm [thread:$0]  %s30_s15, 128, %s100_s2, [#allocation3]  }
  0x82   :  { %61 = dma.done.wait [#allocation3], 128  }
  0x83   :  { %62 = vsyncadd [#allocation3], 4294967168 }
  0x84   :  { %36 = vsyncpa [#allocation3], 1 }

</bundles_post_ra>
